<compile_context>
chip_gen: v7x
topology: tpu7x:2x2x1
jax: 0.10.0
libtpu: 0.0.40
codegen_flags: <defaults>
</compile_context>

<pallas_src>
import jax
import jax.numpy as jnp
from jax import lax
from jax.experimental import pallas as pl
from jax.experimental.pallas import tpu as pltpu


def lstm_mlp_kernel(x2d_ref, h0_ref, c0_ref,
                    wih_ref, whh_ref, b_ref,
                    w1_ref, b1_ref, w2_ref, b2_ref, w3_ref, b3_ref,
                    out_ref,
                    gx_scr):
    """Whole forward pass in one kernel invocation (no grid).

    x2d_ref: (T*B, F)   time-major, batch-padded input, flattened for the
                        hoisted input projection
    h0/c0:   (B, H)     initial states (batch-padded)
    wih_ref: (F, 4H)    input->gates   (PyTorch W_ih transposed)
    whh_ref: (H, 4H)    hidden->gates  (PyTorch W_hh transposed)
    b_ref:   (1, 4H)    b_ih + b_hh
    w1..w3:  MLP head weights (in, out); b1..b3: (1, out)
    out_ref: (B, output_size)
    gx_scr:  (T, B, 4H) VMEM scratch holding the precomputed input projection
    """
    T, B, G = gx_scr.shape          # G = 4H = 128 -> exactly one vreg lane width
    H = h0_ref.shape[-1]

    # ---- Hoisted input projection: one MXU matmul, bias folded in. ----
    gx = (jnp.dot(x2d_ref[...], wih_ref[...],
                  preferred_element_type=jnp.float32)
          + b_ref[...])                            # (T*B, 4H)
    gx_scr[...] = gx.reshape(T, B, G)

    # ---- One full-vreg sigmoid covers all four gates. ----
    # tanh(x) = 2*sigmoid(2x) - 1  -> pre-scale the g-slice by 2, then fix up.
    lane = lax.broadcasted_iota(jnp.int32, (B, G), 1)
    g_sel = (lane >= 2 * H) & (lane < 3 * H)
    scale = jnp.where(g_sel, 2.0, 1.0).astype(jnp.float32)   # hoisted, (B, 4H)

    def step(t, carry):
        h, c = carry
        gates = gx_scr[t] + jnp.dot(h, whh_ref[...],
                                    preferred_element_type=jnp.float32)
        s = jax.nn.sigmoid(gates * scale)          # single full-width EUP pass
        i = s[:, 0 * H:1 * H]
        f = s[:, 1 * H:2 * H]
        g = 2.0 * s[:, 2 * H:3 * H] - 1.0          # == tanh(gates_g)
        o = s[:, 3 * H:4 * H]
        c_new = f * c + i * g
        h_new = o * jnp.tanh(c_new)
        return h_new, c_new

    # T is small & static: fully unroll so the scheduler sees the whole chain.
    h_last, _ = lax.fori_loop(0, T, step, (h0_ref[...], c0_ref[...]),
                              unroll=True)

    # ---- MLP head on the last hidden state (== lstm_out[:, T-1, :]). ----
    z1 = jnp.maximum(
        jnp.dot(h_last, w1_ref[...], preferred_element_type=jnp.float32)
        + b1_ref[...], 0.0)
    z2 = jnp.maximum(
        jnp.dot(z1, w2_ref[...], preferred_element_type=jnp.float32)
        + b2_ref[...], 0.0)
    out_ref[...] = (jnp.dot(z2, w3_ref[...],
                            preferred_element_type=jnp.float32)
                    + b3_ref[...])


def lstm_forward(x, h0, c0, params):
    """x: (B, T, F) -> (B, 1, output_size), matching the PyTorch module."""
    B, T, F = x.shape
    H = h0.shape[-1]
    G = 4 * H
    L1 = params["w1"].shape[-1]
    L2 = params["w2"].shape[-1]
    out_size = params["w3"].shape[-1]

    # Pad batch to a full f32 sublane multiple so every tile is (8, 128)-dense.
    B_pad = max(8, ((B + 7) // 8) * 8)
    pad = B_pad - B

    x_tbf = jnp.transpose(x, (1, 0, 2))            # (T, B, F) time-major
    if pad:
        x_tbf = jnp.pad(x_tbf, ((0, 0), (0, pad), (0, 0)))
        h0p = jnp.pad(h0, ((0, pad), (0, 0)))
        c0p = jnp.pad(c0, ((0, pad), (0, 0)))
    else:
        h0p, c0p = h0, c0
    x2d = x_tbf.reshape(T * B_pad, F)              # operand of hoisted matmul

    vmem_spec = pl.BlockSpec(memory_space=pltpu.MemorySpace.VMEM)

    flops = (2 * T * B_pad * F * G                 # hoisted input projection
             + 2 * T * B_pad * H * G               # recurrent projection
             + 10 * T * B_pad * G                  # gate elementwise work
             + 2 * B_pad * (H * L1 + L1 * L2 + L2 * out_size))
    transcendentals = T * B_pad * (G + H)          # sigmoid(4H) + tanh(H) / step
    bytes_accessed = 4 * (x2d.size + h0p.size + c0p.size
                          + sum(int(p.size) for p in params.values())
                          + B_pad * out_size)

    out = pl.pallas_call(
        lstm_mlp_kernel,
        out_shape=jax.ShapeDtypeStruct((B_pad, out_size), jnp.float32),
        in_specs=[vmem_spec] * 12,
        out_specs=vmem_spec,
        scratch_shapes=[
            pltpu.VMEM((T, B_pad, G), jnp.float32),   # precomputed x-projection
        ],
        compiler_params=pltpu.CompilerParams(
            vmem_limit_bytes=32 * 1024 * 1024),
        cost_estimate=pl.CostEstimate(
            flops=int(flops),
            transcendentals=int(transcendentals),
            bytes_accessed=int(bytes_accessed)),
    )(x2d, h0p, c0p,
      params["wih"], params["whh"], params["b"],
      params["w1"], params["b1"],
      params["w2"], params["b2"],
      params["w3"], params["b3"])

    # Strip batch padding; index_select(..., [window_size-1]) keeps a
    # singleton time axis -> (B, 1, output_size).
    return out[:B].reshape(B, 1, out_size)


def reference_forward(x, h0, c0, p):
    """Pure-JAX reference (lax.scan) for verification."""
    H = h0.shape[-1]

    def step(carry, x_t):
        h, c = carry
        gates = x_t @ p["wih"] + h @ p["whh"] + p["b"]
        i = jax.nn.sigmoid(gates[:, 0 * H:1 * H])
        f = jax.nn.sigmoid(gates[:, 1 * H:2 * H])
        g = jnp.tanh(gates[:, 2 * H:3 * H])
        o = jax.nn.sigmoid(gates[:, 3 * H:4 * H])
        c = f * c + i * g
        h = o * jnp.tanh(c)
        return (h, c), None

    (h, _), _ = lax.scan(step, (h0, c0), jnp.transpose(x, (1, 0, 2)))
    z1 = jnp.maximum(h @ p["w1"] + p["b1"], 0.0)
    z2 = jnp.maximum(z1 @ p["w2"] + p["b2"], 0.0)
    out = z2 @ p["w3"] + p["b3"]
    return out[:, None, :]


def make_params(key, n_features, h_size, output_size):
    """Deterministic parameter init (shapes follow nn.LSTM / nn.Linear)."""
    layer_dim_1 = int(h_size / 2 if h_size > 32 else 32)
    layer_dim_2 = int(layer_dim_1 / 2)
    k = 1.0 / jnp.sqrt(h_size)
    keys = jax.random.split(key, 12)

    def u(kk, shape, bound):
        return jax.random.uniform(kk, shape, jnp.float32, -bound, bound)

    params = {
        # nn.LSTM: weight_ih_l0 (4H, F), weight_hh_l0 (4H, H) -> stored transposed
        "wih": u(keys[0], (n_features, 4 * h_size), k),
        "whh": u(keys[1], (h_size, 4 * h_size), k),
        "b":   u(keys[2], (1, 4 * h_size), k) + u(keys[3], (1, 4 * h_size), k),
        # nn.Linear(h_size, layer_dim_1) etc. -> stored as (in, out)
        "w1":  u(keys[4], (h_size, layer_dim_1), 1.0 / jnp.sqrt(h_size)),
        "b1":  u(keys[5], (1, layer_dim_1), 1.0 / jnp.sqrt(h_size)),
        "w2":  u(keys[6], (layer_dim_1, layer_dim_2), 1.0 / jnp.sqrt(layer_dim_1)),
        "b2":  u(keys[7], (1, layer_dim_2), 1.0 / jnp.sqrt(layer_dim_1)),
        "w3":  u(keys[8], (layer_dim_2, output_size), 1.0 / jnp.sqrt(layer_dim_2)),
        "b3":  u(keys[9], (1, output_size), 1.0 / jnp.sqrt(layer_dim_2)),
    }
    return params


if __name__ == "__main__":
    # Small shapes consistent with the module: n_features=4, window_size=8,
    # h_size=32, output_size=8, n_layers=1, unidirectional.
    B, T, F, H, OUT = 2, 8, 4, 32, 8

    key = jax.random.PRNGKey(0)
    k_x, k_h, k_c, k_p = jax.random.split(key, 4)

    x = jax.random.normal(k_x, (B, T, F), jnp.float32)
    # TODO(synk): the PyTorch module redraws h0/c0 with torch.randn on every
    # forward call; here they are deterministic normal draws for reproducibility.
    h0 = jax.random.normal(k_h, (B, H), jnp.float32)
    c0 = jax.random.normal(k_c, (B, H), jnp.float32)

    params = make_params(k_p, F, H, OUT)

    out = jax.block_until_ready(lstm_forward(x, h0, c0, params))
    ref = reference_forward(x, h0, c0, params)

    assert out.shape == (B, 1, OUT), out.shape
    max_err = float(jnp.max(jnp.abs(out - ref)))
    assert max_err < 1e-4, max_err

    print("KERNEL_OK")
</pallas_src>

<mosaic_0001>
module attributes {stable_mosaic.version = 11 : i64} {
  func.func @lstm_mlp_kernel(%arg0: memref<64x4xf32, #tpu.memory_space<vmem>>, %arg1: memref<8x32xf32, #tpu.memory_space<vmem>>, %arg2: memref<8x32xf32, #tpu.memory_space<vmem>>, %arg3: memref<4x128xf32, #tpu.memory_space<vmem>>, %arg4: memref<32x128xf32, #tpu.memory_space<vmem>>, %arg5: memref<1x128xf32, #tpu.memory_space<vmem>>, %arg6: memref<32x32xf32, #tpu.memory_space<vmem>>, %arg7: memref<1x32xf32, #tpu.memory_space<vmem>>, %arg8: memref<32x16xf32, #tpu.memory_space<vmem>>, %arg9: memref<1x16xf32, #tpu.memory_space<vmem>>, %arg10: memref<16x8xf32, #tpu.memory_space<vmem>>, %arg11: memref<1x8xf32, #tpu.memory_space<vmem>>, %arg12: memref<8x8xf32, #tpu.memory_space<vmem>>, %arg13: memref<8x8x128xf32, #tpu.memory_space<vmem>>) attributes {dimension_semantics = [], scalar_prefetch = 0 : i64, scratch_operands = 1 : i64, tpu.core_type = #tpu.core_type<tc>} {
    %c0 = arith.constant 0 : index
    %c0_0 = arith.constant 0 : index
    %0 = vector.load %arg0[%c0, %c0_0] : memref<64x4xf32, #tpu.memory_space<vmem>>, vector<64x4xf32>
    %c0_1 = arith.constant 0 : index
    %c0_2 = arith.constant 0 : index
    %1 = vector.load %arg3[%c0_1, %c0_2] : memref<4x128xf32, #tpu.memory_space<vmem>>, vector<4x128xf32>
    %cst = arith.constant dense<0.000000e+00> : vector<64x128xf32>
    %2 = tpu.matmul %0, %1, %cst {dimension_numbers = #tpu.dot_dimension_numbers<[1], [0], [0], [1], [0, 0, 1, 1], [], []>} : vector<64x4xf32>, vector<4x128xf32>, vector<64x128xf32> -> vector<64x128xf32>
    %c0_3 = arith.constant 0 : index
    %c0_4 = arith.constant 0 : index
    %3 = vector.load %arg5[%c0_3, %c0_4] : memref<1x128xf32, #tpu.memory_space<vmem>>, vector<1x128xf32>
    %4 = vector.broadcast %3 : vector<1x128xf32> to vector<64x128xf32>
    %5 = arith.addf %2, %4 : vector<64x128xf32>
    %6 = vector.shape_cast %5 : vector<64x128xf32> to vector<8x8x128xf32>
    %c0_5 = arith.constant 0 : index
    %c0_6 = arith.constant 0 : index
    %c0_7 = arith.constant 0 : index
    %7 = vector.load %arg13[%c0_5, %c0_6, %c0_7] : memref<8x8x128xf32, #tpu.memory_space<vmem>>, vector<8x8x128xf32>
    tpu.vector_store %arg13[%c0_5, %c0_6, %c0_7], %6 {strides = array<i32>} : memref<8x8x128xf32, #tpu.memory_space<vmem>>, vector<8x8x128xf32>,
    %8 = tpu.iota {dimensions = array<i32: 1>} : vector<8x128xi32>
    %c64_i32 = arith.constant 64 : i32
    %9 = vector.broadcast %c64_i32 : i32 to vector<8x128xi32>
    %10 = arith.cmpi sge, %8, %9 : vector<8x128xi32>
    %c96_i32 = arith.constant 96 : i32
    %11 = vector.broadcast %c96_i32 : i32 to vector<8x128xi32>
    %12 = arith.cmpi slt, %8, %11 : vector<8x128xi32>
    %13 = arith.andi %10, %12 : vector<8x128xi1>
    %cst_8 = arith.constant 2.000000e+00 : f32
    %cst_9 = arith.constant 1.000000e+00 : f32
    %14 = vector.broadcast %cst_8 : f32 to vector<8x128xf32>
    %15 = vector.broadcast %cst_9 : f32 to vector<8x128xf32>
    %16 = arith.select %13, %14, %15 : vector<8x128xi1>, vector<8x128xf32>
    %c0_10 = arith.constant 0 : index
    %c0_11 = arith.constant 0 : index
    %17 = vector.load %arg1[%c0_10, %c0_11] : memref<8x32xf32, #tpu.memory_space<vmem>>, vector<8x32xf32>
    %c0_12 = arith.constant 0 : index
    %c0_13 = arith.constant 0 : index
    %18 = vector.load %arg2[%c0_12, %c0_13] : memref<8x32xf32, #tpu.memory_space<vmem>>, vector<8x32xf32>
    %c0_i32 = arith.constant 0 : i32
    %19 = arith.index_cast %c0_i32 : i32 to index
    %c0_14 = arith.constant 0 : index
    %c0_15 = arith.constant 0 : index
    %20 = vector.load %arg13[%19, %c0_14, %c0_15] : memref<8x8x128xf32, #tpu.memory_space<vmem>>, vector<1x8x128xf32>
    %21 = vector.shape_cast %20 : vector<1x8x128xf32> to vector<8x128xf32>
    %c0_16 = arith.constant 0 : index
    %c0_17 = arith.constant 0 : index
    %22 = vector.load %arg4[%c0_16, %c0_17] : memref<32x128xf32, #tpu.memory_space<vmem>>, vector<32x128xf32>
    %cst_18 = arith.constant dense<0.000000e+00> : vector<8x128xf32>
    %23 = tpu.matmul %17, %22, %cst_18 {dimension_numbers = #tpu.dot_dimension_numbers<[1], [0], [0], [1], [0, 0, 1, 1], [], []>} : vector<8x32xf32>, vector<32x128xf32>, vector<8x128xf32> -> vector<8x128xf32>
    %24 = arith.addf %21, %23 : vector<8x128xf32>
    %25 = arith.mulf %24, %16 : vector<8x128xf32>
    %26 = arith.negf %25 : vector<8x128xf32>
    %27 = math.exp %26 : vector<8x128xf32>
    %cst_19 = arith.constant 1.000000e+00 : f32
    %28 = vector.broadcast %cst_19 : f32 to vector<8x128xf32>
    %29 = arith.addf %28, %27 : vector<8x128xf32>
    %30 = arith.divf %28, %29 : vector<8x128xf32>
    %31 = vector.extract_strided_slice %30 {offsets = [0, 0], sizes = [8, 32], strides = [1, 1]} : vector<8x128xf32> to vector<8x32xf32>
    %32 = vector.extract_strided_slice %30 {offsets = [0, 32], sizes = [8, 32], strides = [1, 1]} : vector<8x128xf32> to vector<8x32xf32>
    %33 = vector.extract_strided_slice %30 {offsets = [0, 64], sizes = [8, 32], strides = [1, 1]} : vector<8x128xf32> to vector<8x32xf32>
    %cst_20 = arith.constant 2.000000e+00 : f32
    %34 = vector.broadcast %cst_20 : f32 to vector<8x32xf32>
    %35 = arith.mulf %34, %33 : vector<8x32xf32>
    %cst_21 = arith.constant 1.000000e+00 : f32
    %36 = vector.broadcast %cst_21 : f32 to vector<8x32xf32>
    %37 = arith.subf %35, %36 : vector<8x32xf32>
    %38 = vector.extract_strided_slice %30 {offsets = [0, 96], sizes = [8, 32], strides = [1, 1]} : vector<8x128xf32> to vector<8x32xf32>
    %39 = arith.mulf %32, %18 : vector<8x32xf32>
    %40 = arith.mulf %31, %37 : vector<8x32xf32>
    %41 = arith.addf %39, %40 : vector<8x32xf32>
    %42 = math.tanh %41 : vector<8x32xf32>
    %43 = arith.mulf %38, %42 : vector<8x32xf32>
    %c1_i32 = arith.constant 1 : i32
    %44 = arith.index_cast %c1_i32 : i32 to index
    %c0_22 = arith.constant 0 : index
    %c0_23 = arith.constant 0 : index
    %45 = vector.load %arg13[%44, %c0_22, %c0_23] : memref<8x8x128xf32, #tpu.memory_space<vmem>>, vector<1x8x128xf32>
    %46 = vector.shape_cast %45 : vector<1x8x128xf32> to vector<8x128xf32>
    %c0_24 = arith.constant 0 : index
    %c0_25 = arith.constant 0 : index
    %47 = vector.load %arg4[%c0_24, %c0_25] : memref<32x128xf32, #tpu.memory_space<vmem>>, vector<32x128xf32>
    %cst_26 = arith.constant dense<0.000000e+00> : vector<8x128xf32>
    %48 = tpu.matmul %43, %47, %cst_26 {dimension_numbers = #tpu.dot_dimension_numbers<[1], [0], [0], [1], [0, 0, 1, 1], [], []>} : vector<8x32xf32>, vector<32x128xf32>, vector<8x128xf32> -> vector<8x128xf32>
    %49 = arith.addf %46, %48 : vector<8x128xf32>
    %50 = arith.mulf %49, %16 : vector<8x128xf32>
    %51 = arith.negf %50 : vector<8x128xf32>
    %52 = math.exp %51 : vector<8x128xf32>
    %cst_27 = arith.constant 1.000000e+00 : f32
    %53 = vector.broadcast %cst_27 : f32 to vector<8x128xf32>
    %54 = arith.addf %53, %52 : vector<8x128xf32>
    %55 = arith.divf %53, %54 : vector<8x128xf32>
    %56 = vector.extract_strided_slice %55 {offsets = [0, 0], sizes = [8, 32], strides = [1, 1]} : vector<8x128xf32> to vector<8x32xf32>
    %57 = vector.extract_strided_slice %55 {offsets = [0, 32], sizes = [8, 32], strides = [1, 1]} : vector<8x128xf32> to vector<8x32xf32>
    %58 = vector.extract_strided_slice %55 {offsets = [0, 64], sizes = [8, 32], strides = [1, 1]} : vector<8x128xf32> to vector<8x32xf32>
    %cst_28 = arith.constant 2.000000e+00 : f32
    %59 = vector.broadcast %cst_28 : f32 to vector<8x32xf32>
    %60 = arith.mulf %59, %58 : vector<8x32xf32>
    %cst_29 = arith.constant 1.000000e+00 : f32
    %61 = vector.broadcast %cst_29 : f32 to vector<8x32xf32>
    %62 = arith.subf %60, %61 : vector<8x32xf32>
    %63 = vector.extract_strided_slice %55 {offsets = [0, 96], sizes = [8, 32], strides = [1, 1]} : vector<8x128xf32> to vector<8x32xf32>
    %64 = arith.mulf %57, %41 : vector<8x32xf32>
    %65 = arith.mulf %56, %62 : vector<8x32xf32>
    %66 = arith.addf %64, %65 : vector<8x32xf32>
    %67 = math.tanh %66 : vector<8x32xf32>
    %68 = arith.mulf %63, %67 : vector<8x32xf32>
    %c2_i32 = arith.constant 2 : i32
    %69 = arith.index_cast %c2_i32 : i32 to index
    %c0_30 = arith.constant 0 : index
    %c0_31 = arith.constant 0 : index
    %70 = vector.load %arg13[%69, %c0_30, %c0_31] : memref<8x8x128xf32, #tpu.memory_space<vmem>>, vector<1x8x128xf32>
    %71 = vector.shape_cast %70 : vector<1x8x128xf32> to vector<8x128xf32>
    %c0_32 = arith.constant 0 : index
    %c0_33 = arith.constant 0 : index
    %72 = vector.load %arg4[%c0_32, %c0_33] : memref<32x128xf32, #tpu.memory_space<vmem>>, vector<32x128xf32>
    %cst_34 = arith.constant dense<0.000000e+00> : vector<8x128xf32>
    %73 = tpu.matmul %68, %72, %cst_34 {dimension_numbers = #tpu.dot_dimension_numbers<[1], [0], [0], [1], [0, 0, 1, 1], [], []>} : vector<8x32xf32>, vector<32x128xf32>, vector<8x128xf32> -> vector<8x128xf32>
    %74 = arith.addf %71, %73 : vector<8x128xf32>
    %75 = arith.mulf %74, %16 : vector<8x128xf32>
    %76 = arith.negf %75 : vector<8x128xf32>
    %77 = math.exp %76 : vector<8x128xf32>
    %cst_35 = arith.constant 1.000000e+00 : f32
    %78 = vector.broadcast %cst_35 : f32 to vector<8x128xf32>
    %79 = arith.addf %78, %77 : vector<8x128xf32>
    %80 = arith.divf %78, %79 : vector<8x128xf32>
    %81 = vector.extract_strided_slice %80 {offsets = [0, 0], sizes = [8, 32], strides = [1, 1]} : vector<8x128xf32> to vector<8x32xf32>
    %82 = vector.extract_strided_slice %80 {offsets = [0, 32], sizes = [8, 32], strides = [1, 1]} : vector<8x128xf32> to vector<8x32xf32>
    %83 = vector.extract_strided_slice %80 {offsets = [0, 64], sizes = [8, 32], strides = [1, 1]} : vector<8x128xf32> to vector<8x32xf32>
    %cst_36 = arith.constant 2.000000e+00 : f32
    %84 = vector.broadcast %cst_36 : f32 to vector<8x32xf32>
    %85 = arith.mulf %84, %83 : vector<8x32xf32>
    %cst_37 = arith.constant 1.000000e+00 : f32
    %86 = vector.broadcast %cst_37 : f32 to vector<8x32xf32>
    %87 = arith.subf %85, %86 : vector<8x32xf32>
    %88 = vector.extract_strided_slice %80 {offsets = [0, 96], sizes = [8, 32], strides = [1, 1]} : vector<8x128xf32> to vector<8x32xf32>
    %89 = arith.mulf %82, %66 : vector<8x32xf32>
    %90 = arith.mulf %81, %87 : vector<8x32xf32>
    %91 = arith.addf %89, %90 : vector<8x32xf32>
    %92 = math.tanh %91 : vector<8x32xf32>
    %93 = arith.mulf %88, %92 : vector<8x32xf32>
    %c3_i32 = arith.constant 3 : i32
    %94 = arith.index_cast %c3_i32 : i32 to index
    %c0_38 = arith.constant 0 : index
    %c0_39 = arith.constant 0 : index
    %95 = vector.load %arg13[%94, %c0_38, %c0_39] : memref<8x8x128xf32, #tpu.memory_space<vmem>>, vector<1x8x128xf32>
    %96 = vector.shape_cast %95 : vector<1x8x128xf32> to vector<8x128xf32>
    %c0_40 = arith.constant 0 : index
    %c0_41 = arith.constant 0 : index
    %97 = vector.load %arg4[%c0_40, %c0_41] : memref<32x128xf32, #tpu.memory_space<vmem>>, vector<32x128xf32>
    %cst_42 = arith.constant dense<0.000000e+00> : vector<8x128xf32>
    %98 = tpu.matmul %93, %97, %cst_42 {dimension_numbers = #tpu.dot_dimension_numbers<[1], [0], [0], [1], [0, 0, 1, 1], [], []>} : vector<8x32xf32>, vector<32x128xf32>, vector<8x128xf32> -> vector<8x128xf32>
    %99 = arith.addf %96, %98 : vector<8x128xf32>
    %100 = arith.mulf %99, %16 : vector<8x128xf32>
    %101 = arith.negf %100 : vector<8x128xf32>
    %102 = math.exp %101 : vector<8x128xf32>
    %cst_43 = arith.constant 1.000000e+00 : f32
    %103 = vector.broadcast %cst_43 : f32 to vector<8x128xf32>
    %104 = arith.addf %103, %102 : vector<8x128xf32>
    %105 = arith.divf %103, %104 : vector<8x128xf32>
    %106 = vector.extract_strided_slice %105 {offsets = [0, 0], sizes = [8, 32], strides = [1, 1]} : vector<8x128xf32> to vector<8x32xf32>
    %107 = vector.extract_strided_slice %105 {offsets = [0, 32], sizes = [8, 32], strides = [1, 1]} : vector<8x128xf32> to vector<8x32xf32>
    %108 = vector.extract_strided_slice %105 {offsets = [0, 64], sizes = [8, 32], strides = [1, 1]} : vector<8x128xf32> to vector<8x32xf32>
    %cst_44 = arith.constant 2.000000e+00 : f32
    %109 = vector.broadcast %cst_44 : f32 to vector<8x32xf32>
    %110 = arith.mulf %109, %108 : vector<8x32xf32>
    %cst_45 = arith.constant 1.000000e+00 : f32
    %111 = vector.broadcast %cst_45 : f32 to vector<8x32xf32>
    %112 = arith.subf %110, %111 : vector<8x32xf32>
    %113 = vector.extract_strided_slice %105 {offsets = [0, 96], sizes = [8, 32], strides = [1, 1]} : vector<8x128xf32> to vector<8x32xf32>
    %114 = arith.mulf %107, %91 : vector<8x32xf32>
    %115 = arith.mulf %106, %112 : vector<8x32xf32>
    %116 = arith.addf %114, %115 : vector<8x32xf32>
    %117 = math.tanh %116 : vector<8x32xf32>
    %118 = arith.mulf %113, %117 : vector<8x32xf32>
    %c4_i32 = arith.constant 4 : i32
    %119 = arith.index_cast %c4_i32 : i32 to index
    %c0_46 = arith.constant 0 : index
    %c0_47 = arith.constant 0 : index
    %120 = vector.load %arg13[%119, %c0_46, %c0_47] : memref<8x8x128xf32, #tpu.memory_space<vmem>>, vector<1x8x128xf32>
    %121 = vector.shape_cast %120 : vector<1x8x128xf32> to vector<8x128xf32>
    %c0_48 = arith.constant 0 : index
    %c0_49 = arith.constant 0 : index
    %122 = vector.load %arg4[%c0_48, %c0_49] : memref<32x128xf32, #tpu.memory_space<vmem>>, vector<32x128xf32>
    %cst_50 = arith.constant dense<0.000000e+00> : vector<8x128xf32>
    %123 = tpu.matmul %118, %122, %cst_50 {dimension_numbers = #tpu.dot_dimension_numbers<[1], [0], [0], [1], [0, 0, 1, 1], [], []>} : vector<8x32xf32>, vector<32x128xf32>, vector<8x128xf32> -> vector<8x128xf32>
    %124 = arith.addf %121, %123 : vector<8x128xf32>
    %125 = arith.mulf %124, %16 : vector<8x128xf32>
    %126 = arith.negf %125 : vector<8x128xf32>
    %127 = math.exp %126 : vector<8x128xf32>
    %cst_51 = arith.constant 1.000000e+00 : f32
    %128 = vector.broadcast %cst_51 : f32 to vector<8x128xf32>
    %129 = arith.addf %128, %127 : vector<8x128xf32>
    %130 = arith.divf %128, %129 : vector<8x128xf32>
    %131 = vector.extract_strided_slice %130 {offsets = [0, 0], sizes = [8, 32], strides = [1, 1]} : vector<8x128xf32> to vector<8x32xf32>
    %132 = vector.extract_strided_slice %130 {offsets = [0, 32], sizes = [8, 32], strides = [1, 1]} : vector<8x128xf32> to vector<8x32xf32>
    %133 = vector.extract_strided_slice %130 {offsets = [0, 64], sizes = [8, 32], strides = [1, 1]} : vector<8x128xf32> to vector<8x32xf32>
    %cst_52 = arith.constant 2.000000e+00 : f32
    %134 = vector.broadcast %cst_52 : f32 to vector<8x32xf32>
    %135 = arith.mulf %134, %133 : vector<8x32xf32>
    %cst_53 = arith.constant 1.000000e+00 : f32
    %136 = vector.broadcast %cst_53 : f32 to vector<8x32xf32>
    %137 = arith.subf %135, %136 : vector<8x32xf32>
    %138 = vector.extract_strided_slice %130 {offsets = [0, 96], sizes = [8, 32], strides = [1, 1]} : vector<8x128xf32> to vector<8x32xf32>
    %139 = arith.mulf %132, %116 : vector<8x32xf32>
    %140 = arith.mulf %131, %137 : vector<8x32xf32>
    %141 = arith.addf %139, %140 : vector<8x32xf32>
    %142 = math.tanh %141 : vector<8x32xf32>
    %143 = arith.mulf %138, %142 : vector<8x32xf32>
    %c5_i32 = arith.constant 5 : i32
    %144 = arith.index_cast %c5_i32 : i32 to index
    %c0_54 = arith.constant 0 : index
    %c0_55 = arith.constant 0 : index
    %145 = vector.load %arg13[%144, %c0_54, %c0_55] : memref<8x8x128xf32, #tpu.memory_space<vmem>>, vector<1x8x128xf32>
    %146 = vector.shape_cast %145 : vector<1x8x128xf32> to vector<8x128xf32>
    %c0_56 = arith.constant 0 : index
    %c0_57 = arith.constant 0 : index
    %147 = vector.load %arg4[%c0_56, %c0_57] : memref<32x128xf32, #tpu.memory_space<vmem>>, vector<32x128xf32>
    %cst_58 = arith.constant dense<0.000000e+00> : vector<8x128xf32>
    %148 = tpu.matmul %143, %147, %cst_58 {dimension_numbers = #tpu.dot_dimension_numbers<[1], [0], [0], [1], [0, 0, 1, 1], [], []>} : vector<8x32xf32>, vector<32x128xf32>, vector<8x128xf32> -> vector<8x128xf32>
    %149 = arith.addf %146, %148 : vector<8x128xf32>
    %150 = arith.mulf %149, %16 : vector<8x128xf32>
    %151 = arith.negf %150 : vector<8x128xf32>
    %152 = math.exp %151 : vector<8x128xf32>
    %cst_59 = arith.constant 1.000000e+00 : f32
    %153 = vector.broadcast %cst_59 : f32 to vector<8x128xf32>
    %154 = arith.addf %153, %152 : vector<8x128xf32>
    %155 = arith.divf %153, %154 : vector<8x128xf32>
    %156 = vector.extract_strided_slice %155 {offsets = [0, 0], sizes = [8, 32], strides = [1, 1]} : vector<8x128xf32> to vector<8x32xf32>
    %157 = vector.extract_strided_slice %155 {offsets = [0, 32], sizes = [8, 32], strides = [1, 1]} : vector<8x128xf32> to vector<8x32xf32>
    %158 = vector.extract_strided_slice %155 {offsets = [0, 64], sizes = [8, 32], strides = [1, 1]} : vector<8x128xf32> to vector<8x32xf32>
    %cst_60 = arith.constant 2.000000e+00 : f32
    %159 = vector.broadcast %cst_60 : f32 to vector<8x32xf32>
    %160 = arith.mulf %159, %158 : vector<8x32xf32>
    %cst_61 = arith.constant 1.000000e+00 : f32
    %161 = vector.broadcast %cst_61 : f32 to vector<8x32xf32>
    %162 = arith.subf %160, %161 : vector<8x32xf32>
    %163 = vector.extract_strided_slice %155 {offsets = [0, 96], sizes = [8, 32], strides = [1, 1]} : vector<8x128xf32> to vector<8x32xf32>
    %164 = arith.mulf %157, %141 : vector<8x32xf32>
    %165 = arith.mulf %156, %162 : vector<8x32xf32>
    %166 = arith.addf %164, %165 : vector<8x32xf32>
    %167 = math.tanh %166 : vector<8x32xf32>
    %168 = arith.mulf %163, %167 : vector<8x32xf32>
    %c6_i32 = arith.constant 6 : i32
    %169 = arith.index_cast %c6_i32 : i32 to index
    %c0_62 = arith.constant 0 : index
    %c0_63 = arith.constant 0 : index
    %170 = vector.load %arg13[%169, %c0_62, %c0_63] : memref<8x8x128xf32, #tpu.memory_space<vmem>>, vector<1x8x128xf32>
    %171 = vector.shape_cast %170 : vector<1x8x128xf32> to vector<8x128xf32>
    %c0_64 = arith.constant 0 : index
    %c0_65 = arith.constant 0 : index
    %172 = vector.load %arg4[%c0_64, %c0_65] : memref<32x128xf32, #tpu.memory_space<vmem>>, vector<32x128xf32>
    %cst_66 = arith.constant dense<0.000000e+00> : vector<8x128xf32>
    %173 = tpu.matmul %168, %172, %cst_66 {dimension_numbers = #tpu.dot_dimension_numbers<[1], [0], [0], [1], [0, 0, 1, 1], [], []>} : vector<8x32xf32>, vector<32x128xf32>, vector<8x128xf32> -> vector<8x128xf32>
    %174 = arith.addf %171, %173 : vector<8x128xf32>
    %175 = arith.mulf %174, %16 : vector<8x128xf32>
    %176 = arith.negf %175 : vector<8x128xf32>
    %177 = math.exp %176 : vector<8x128xf32>
    %cst_67 = arith.constant 1.000000e+00 : f32
    %178 = vector.broadcast %cst_67 : f32 to vector<8x128xf32>
    %179 = arith.addf %178, %177 : vector<8x128xf32>
    %180 = arith.divf %178, %179 : vector<8x128xf32>
    %181 = vector.extract_strided_slice %180 {offsets = [0, 0], sizes = [8, 32], strides = [1, 1]} : vector<8x128xf32> to vector<8x32xf32>
    %182 = vector.extract_strided_slice %180 {offsets = [0, 32], sizes = [8, 32], strides = [1, 1]} : vector<8x128xf32> to vector<8x32xf32>
    %183 = vector.extract_strided_slice %180 {offsets = [0, 64], sizes = [8, 32], strides = [1, 1]} : vector<8x128xf32> to vector<8x32xf32>
    %cst_68 = arith.constant 2.000000e+00 : f32
    %184 = vector.broadcast %cst_68 : f32 to vector<8x32xf32>
    %185 = arith.mulf %184, %183 : vector<8x32xf32>
    %cst_69 = arith.constant 1.000000e+00 : f32
    %186 = vector.broadcast %cst_69 : f32 to vector<8x32xf32>
    %187 = arith.subf %185, %186 : vector<8x32xf32>
    %188 = vector.extract_strided_slice %180 {offsets = [0, 96], sizes = [8, 32], strides = [1, 1]} : vector<8x128xf32> to vector<8x32xf32>
    %189 = arith.mulf %182, %166 : vector<8x32xf32>
    %190 = arith.mulf %181, %187 : vector<8x32xf32>
    %191 = arith.addf %189, %190 : vector<8x32xf32>
    %192 = math.tanh %191 : vector<8x32xf32>
    %193 = arith.mulf %188, %192 : vector<8x32xf32>
    %c7_i32 = arith.constant 7 : i32
    %194 = arith.index_cast %c7_i32 : i32 to index
    %c0_70 = arith.constant 0 : index
    %c0_71 = arith.constant 0 : index
    %195 = vector.load %arg13[%194, %c0_70, %c0_71] : memref<8x8x128xf32, #tpu.memory_space<vmem>>, vector<1x8x128xf32>
    %196 = vector.shape_cast %195 : vector<1x8x128xf32> to vector<8x128xf32>
    %c0_72 = arith.constant 0 : index
    %c0_73 = arith.constant 0 : index
    %197 = vector.load %arg4[%c0_72, %c0_73] : memref<32x128xf32, #tpu.memory_space<vmem>>, vector<32x128xf32>
    %cst_74 = arith.constant dense<0.000000e+00> : vector<8x128xf32>
    %198 = tpu.matmul %193, %197, %cst_74 {dimension_numbers = #tpu.dot_dimension_numbers<[1], [0], [0], [1], [0, 0, 1, 1], [], []>} : vector<8x32xf32>, vector<32x128xf32>, vector<8x128xf32> -> vector<8x128xf32>
    %199 = arith.addf %196, %198 : vector<8x128xf32>
    %200 = arith.mulf %199, %16 : vector<8x128xf32>
    %201 = arith.negf %200 : vector<8x128xf32>
    %202 = math.exp %201 : vector<8x128xf32>
    %cst_75 = arith.constant 1.000000e+00 : f32
    %203 = vector.broadcast %cst_75 : f32 to vector<8x128xf32>
    %204 = arith.addf %203, %202 : vector<8x128xf32>
    %205 = arith.divf %203, %204 : vector<8x128xf32>
    %206 = vector.extract_strided_slice %205 {offsets = [0, 0], sizes = [8, 32], strides = [1, 1]} : vector<8x128xf32> to vector<8x32xf32>
    %207 = vector.extract_strided_slice %205 {offsets = [0, 32], sizes = [8, 32], strides = [1, 1]} : vector<8x128xf32> to vector<8x32xf32>
    %208 = vector.extract_strided_slice %205 {offsets = [0, 64], sizes = [8, 32], strides = [1, 1]} : vector<8x128xf32> to vector<8x32xf32>
    %cst_76 = arith.constant 2.000000e+00 : f32
    %209 = vector.broadcast %cst_76 : f32 to vector<8x32xf32>
    %210 = arith.mulf %209, %208 : vector<8x32xf32>
    %cst_77 = arith.constant 1.000000e+00 : f32
    %211 = vector.broadcast %cst_77 : f32 to vector<8x32xf32>
    %212 = arith.subf %210, %211 : vector<8x32xf32>
    %213 = vector.extract_strided_slice %205 {offsets = [0, 96], sizes = [8, 32], strides = [1, 1]} : vector<8x128xf32> to vector<8x32xf32>
    %214 = arith.mulf %207, %191 : vector<8x32xf32>
    %215 = arith.mulf %206, %212 : vector<8x32xf32>
    %216 = arith.addf %214, %215 : vector<8x32xf32>
    %217 = math.tanh %216 : vector<8x32xf32>
    %218 = arith.mulf %213, %217 : vector<8x32xf32>
    %c8_i32 = arith.constant 8 : i32
    %c0_78 = arith.constant 0 : index
    %c0_79 = arith.constant 0 : index
    %219 = vector.load %arg6[%c0_78, %c0_79] : memref<32x32xf32, #tpu.memory_space<vmem>>, vector<32x32xf32>
    %cst_80 = arith.constant dense<0.000000e+00> : vector<8x32xf32>
    %220 = tpu.matmul %218, %219, %cst_80 {dimension_numbers = #tpu.dot_dimension_numbers<[1], [0], [0], [1], [0, 0, 1, 1], [], []>} : vector<8x32xf32>, vector<32x32xf32>, vector<8x32xf32> -> vector<8x32xf32>
    %c0_81 = arith.constant 0 : index
    %c0_82 = arith.constant 0 : index
    %221 = vector.load %arg7[%c0_81, %c0_82] : memref<1x32xf32, #tpu.memory_space<vmem>>, vector<1x32xf32>
    %222 = vector.broadcast %221 : vector<1x32xf32> to vector<8x32xf32>
    %223 = arith.addf %220, %222 : vector<8x32xf32>
    %cst_83 = arith.constant 0.000000e+00 : f32
    %224 = vector.broadcast %cst_83 : f32 to vector<8x32xf32>
    %225 = arith.maximumf %223, %224 : vector<8x32xf32>
    %c0_84 = arith.constant 0 : index
    %c0_85 = arith.constant 0 : index
    %226 = vector.load %arg8[%c0_84, %c0_85] : memref<32x16xf32, #tpu.memory_space<vmem>>, vector<32x16xf32>
    %cst_86 = arith.constant dense<0.000000e+00> : vector<8x16xf32>
    %227 = tpu.matmul %225, %226, %cst_86 {dimension_numbers = #tpu.dot_dimension_numbers<[1], [0], [0], [1], [0, 0, 1, 1], [], []>} : vector<8x32xf32>, vector<32x16xf32>, vector<8x16xf32> -> vector<8x16xf32>
    %c0_87 = arith.constant 0 : index
    %c0_88 = arith.constant 0 : index
    %228 = vector.load %arg9[%c0_87, %c0_88] : memref<1x16xf32, #tpu.memory_space<vmem>>, vector<1x16xf32>
    %229 = vector.broadcast %228 : vector<1x16xf32> to vector<8x16xf32>
    %230 = arith.addf %227, %229 : vector<8x16xf32>
    %cst_89 = arith.constant 0.000000e+00 : f32
    %231 = vector.broadcast %cst_89 : f32 to vector<8x16xf32>
    %232 = arith.maximumf %230, %231 : vector<8x16xf32>
    %c0_90 = arith.constant 0 : index
    %c0_91 = arith.constant 0 : index
    %233 = vector.load %arg10[%c0_90, %c0_91] : memref<16x8xf32, #tpu.memory_space<vmem>>, vector<16x8xf32>
    %cst_92 = arith.constant dense<0.000000e+00> : vector<8x8xf32>
    %234 = tpu.matmul %232, %233, %cst_92 {dimension_numbers = #tpu.dot_dimension_numbers<[1], [0], [0], [1], [0, 0, 1, 1], [], []>} : vector<8x16xf32>, vector<16x8xf32>, vector<8x8xf32> -> vector<8x8xf32>
    %c0_93 = arith.constant 0 : index
    %c0_94 = arith.constant 0 : index
    %235 = vector.load %arg11[%c0_93, %c0_94] : memref<1x8xf32, #tpu.memory_space<vmem>>, vector<1x8xf32>
    %236 = vector.broadcast %235 : vector<1x8xf32> to vector<8x8xf32>
    %237 = arith.addf %234, %236 : vector<8x8xf32>
    %c0_95 = arith.constant 0 : index
    %c0_96 = arith.constant 0 : index
    %238 = vector.load %arg12[%c0_95, %c0_96] : memref<8x8xf32, #tpu.memory_space<vmem>>, vector<8x8xf32>
    tpu.vector_store %arg12[%c0_95, %c0_96], %237 {strides = array<i32>} : memref<8x8xf32, #tpu.memory_space<vmem>>, vector<8x8xf32>,
    return
  }
}

</mosaic_0001>

<bundles_post_ra>
// kernel: tpu_custom_call.1
= control target key start
LH: loop header
LB: loop body
LE: loop exit
PB: predicated region body
PF: predicated region fallthrough
CT: control target
= control target key end

     0   :  { %vm83_vm0 = vcmask 1043456   ;;  %v1692_v3 = vmov 0.0|0.0   ;;  %vm58_vm1 = vcmask 31744   ;;  %s2009_s0 = inlined_call_operand.vmem [shape: f32[64,4], index: 0, kind: input, shape index: {}]   ;;  %s2010_s1 = inlined_call_operand.vmem [shape: f32[8,32], index: 1, kind: input, shape index: {}]   ;;  %s2011_s2 = inlined_call_operand.vmem [shape: f32[8,32], index: 2, kind: input, shape index: {}]   ;;  %s2012_s3 = inlined_call_operand.vmem [shape: f32[4,128], index: 3, kind: input, shape index: {}]   ;;  %s2013_s4 = inlined_call_operand.vmem [shape: f32[32,128], index: 4, kind: input, shape index: {}]   ;;  %s2014_s5 = inlined_call_operand.vmem [shape: f32[1,128], index: 5, kind: input, shape index: {}]   ;;  %s2015_s6 = inlined_call_operand.vmem [shape: f32[32,32], index: 6, kind: input, shape index: {}]   ;;  %s2016_s7 = inlined_call_operand.vmem [shape: f32[1,32], index: 7, kind: input, shape index: {}]   ;;  %s2017_s8 = inlined_call_operand.vmem [shape: f32[32,16], index: 8, kind: input, shape index: {}]   ;;  %s2018_s9 = inlined_call_operand.vmem [shape: f32[1,16], index: 9, kind: input, shape index: {}]   ;;  %s2019_s10 = inlined_call_operand.vmem [shape: f32[16,8], index: 10, kind: input, shape index: {}]   ;;  %s2020_s11 = inlined_call_operand.vmem [shape: f32[1,8], index: 11, kind: input, shape index: {}]   ;;  %s2021_s12 = inlined_call_operand.hbm [shape: f32[8,8], index: 12, kind: output, shape index: {}]  }
   0x1   :  { %v209_v0 = vld [vmem:[%s2013_s4] sm:$0xff]  ;;  %v210_v1 = vld [vmem:[%s2013_s4 + $0x8] sm:$0xff]  ;;  %1550 = vmatprep.subr.bf16.mxu1 %v1692_v3  ;;  %v211_v7 = vld [vmem:[%s2013_s4 + $0x10] sm:$0xff] }
   0x2   :  { %v50_v2 = vld [vmem:[%s2012_s3] sm:$0xf]  ;;  %v1774_v4 = vpack.c.bf16 %v210_v1, %v209_v0  ;;  %v43_v6 = vld [vmem:[%s2009_s0 + $0x8] sm:$0xff]  ;;  %v212_v8 = vld [vmem:[%s2013_s4 + $0x18] sm:$0xff] }
   0x3   :  { %1419 = vmatprep.subr.msk.mxu0 %vm83_vm0, %v50_v2  ;;  %v42_v5 = vld [vmem:[%s2009_s0] sm:$0xff] }
   0x4   :  { %1420 = vmatpush3.msk.msra.mxu0 %vm83_vm0, %v50_v2  ;;  %1421 = vmatprep.mubr.msk.f32.mxu0 %vm58_vm1, %v42_v5 }
   0x5   :  { %17 = vsyncpa [#allocation4], 0  ;;  %1552 = vmatpush3.bf16.msra.mxu1 %v1774_v4  ;;  %1422 = vmatmul.mubr.msk.f32.vlgmr.msra.gmra.mrb[0].mxu0 %vm58_vm1, %v43_v6  ;;  %v1791_v9 = vpack.c.bf16 %v212_v8, %v211_v7  ;;  %vm1693_vm2 = vmmov 0   ;;  %v1694_v10 = vmov 0.0   ;;  %v206_v11 = vld [vmem:[%s2010_s1] sm:$0xff]  ;;  %vm213_vm3 = vcmask 261120  }
   0x6   :  { %1553 = vmatprep.subr.bf16.mxu1 %v1692_v3  ;;  %1441 = vmatprep.mubr.msk.f32.mxu1 %vm1693_vm2, %v1694_v10  ;;  %v200_v12 = vlaneseq  ;;  %v1816_v15 = vld [vmem:[%s2014_s5] ss:$0 sm:$0xff]  ;;  %v1695_v18 = vmov 1.0   ;;  %s1696_s5 = smov 64   ;;  %s1697_s20 = smov 32   ;;  %v44_v57 = vld [vmem:[%s2009_s0 + $0x10] sm:$0xff] }
   0x7   :  { %1562 = vmatprep.subr.bf16.mxu0 %v1692_v3  ;;  %v207_v30 = vld [vmem:[%s2011_s2] sm:$0xff]  ;;  %v45_v58 = vld [vmem:[%s2009_s0 + $0x18] sm:$0xff]  ;;  %1424 = vmatprep.mubr.msk.f32.mxu0 %vm58_vm1, %v44_v57  ;;  %v47_v60 = vld [vmem:[%s2009_s0 + $0x28] sm:$0xff]  ;;  %vm1227_vm7 = vcmask 130048   ;;  %s1698_s13 = smov [#allocation3]   ;;  %vm1301_vm8 = vcmask 64512  }
   0x8   :  { %1564 = vmatpush3.bf16.msra.mxu0 %v1774_v4  ;;  %v201_v13 = vand.u32 127, %v200_v12  ;;  %v46_v59 = vld [vmem:[%s2009_s0 + $0x20] sm:$0xff]  ;;  %v48_v61 = vld [vmem:[%s2009_s0 + $0x30] sm:$0xff]  ;;  %v49_v62 = vld [vmem:[%s2009_s0 + $0x38] sm:$0xff]  ;;  %s1309_s0 = sshll.u32 %s1698_s13, 4  ;;  %s1310_s0 = int_to_ptr.vmem [resolvable:$true] %s1309_s0 }
   0x9   :  { %1555 = vmatpush3.bf16.msra.mxu1 %v1791_v9  ;;  %1565 = vmatprep.subr.bf16.mxu0 %v1692_v3  ;;  %p1673_p1 = scmp.lt.s32.totalorder %s1310_s0, %s1310_s0 }
   0xa   :  { %1556 = vmatprep.subr.bf16.mxu1 %v1692_v3  ;;  %vm202_vm4 = vcmp.ge.s32.totalorder %v201_v13, 64  ;;  %vm203_vm5 = vcmp.lt.s32.totalorder %v201_v13, 96  ;;  %1425 = vmatmul.mubr.msk.f32.gmra.mrb[2].mxu0 %vm58_vm1, %v45_v58 }
   0xb   :  { %vm204_vm6 = vmand %vm202_vm4, %vm203_vm5  ;;  %1427 = vmatprep.mubr.msk.f32.mxu0 %vm58_vm1, %v46_v59 }
   0xc   :  { %1442 = vmatmul.mubr.msk.f32.vlgmr.msra.gmra.mrb[0].mxu1 %vm213_vm3, %v206_v11  ;;  %1567 = vmatpush3.bf16.msra.mxu0 %v1791_v9  ;;  %v1819_v19 = vsel %vm204_vm6, 2.0, %v1695_v18 }
   0xd   :  { %1558 = vmatpush3.bf16.msra.mxu1 %v1774_v4  ;;  %1452 = vmatprep.mubr.msk.f32.mxu1 %vm1693_vm2, %v1694_v10 }
   0xe   :  { %1559 = vmatprep.subr.bf16.mxu1 %v1692_v3  ;;  %1574 = vmatprep.subr.bf16.mxu0 %v1692_v3 }
   0xf   :  { %1428 = vmatmul.mubr.msk.f32.gmra.mrb[4].mxu0 %vm58_vm1, %v47_v60 }
  0x10   :  { %1430 = vmatprep.mubr.msk.f32.mxu0 %vm58_vm1, %v48_v61 }
  0x11   :  { %1561 = vmatpush3.bf16.msra.mxu1 %v1791_v9 }
  0x12   :  { %1568 = vmatprep.subr.bf16.mxu1 %v1692_v3 }
  0x13   :  { %1431 = vmatmul.mubr.msk.f32.gmra.mrb[6].mxu0 %vm58_vm1, %v49_v62 }
  0x14   :  { %1463 = vmatprep.mubr.msk.f32.mxu0 %vm1693_vm2, %v1694_v10 }
  0xd8   :  { %v1423_v14 = vpop.f32.mrb[0].mxu0 }
  0xd9   :  { %v153_v16 = vpop.f32.mrb[1].mxu0  ;;  %v159_v41 = vadd.f32 %v1423_v14, %v1816_v15 }
  0xda   :  { %v154_v17 = vadd.f32 %v1816_v15, %v153_v16 }
  0xdd   :  { %v1426_v2 = vpop.f32.mrb[2].mxu0 }
  0xde   :  { %v163_v5 = vpop.f32.mrb[3].mxu0 }
  0xdf   :  { %v283_v20 = vpop.f32.mrb[0].mxu1  ;;  %v164_v13 = vadd.f32 %v1816_v15, %v163_v5 }
  0xe0   :  { %v287_v21 = vadd.f32 %v283_v20, %v154_v17  ;;  %v1443_v22 = vpop.f32.mrb[1].mxu1 }
  0xe2   :  { %v288_v23 = vmul.f32 %v287_v21, %v1819_v19  ;;  %v1869_v6 = vpop.f32.mrb[4].mxu0 }
  0xe3   :  { %v1871_v7 = vpop.f32.mrb[5].mxu0 }
  0xe4   :  { %v1328_v24 = vmul.f32 -1.442695, %v288_v23 }
  0xe6   :  { %1620 = vpow2.f32 %v1328_v24  ;;  %v1873_v8 = vpop.f32.mrb[6].mxu0 }
  0xe7   :  { %v1875_v11 = vpop.f32.mrb[7].mxu0 }
  0xf0   :  { %v1621_v25 = vpop.eup %1620 }
  0xf1   :  { %v292_v26 = vadd.f32 1.0, %v1621_v25 }
  0xf3   :  { %1622 = vrcp.f32 %v292_v26 }
  0xfd   :  { %v1623_v27 = vpop.eup %1622 }
  0xfe   :  { %v295_v28 = vmul.f32 2.0, %v1623_v27 }
 0x100   :  { %v1329_v29 = vadd.f32 -1.0, %v295_v28 }
 0x102   :  { %303 = vrot.lane.b32.xlu0 %v1329_v29, %s1696_s5 }
 0x106   :  { %298 = vrot.lane.b32.xlu0 %v207_v30, %s1697_s20 }
 0x174   :  { %v304_v31 = vpop.permute.xlu0 %303 }
 0x175   :  { %v306_v32 = vmul.f32 %v1623_v27, %v304_v31 }
 0x177   :  { %308 = vrot.lane.b32.xlu1 %v306_v32, %s1697_s20 }
 0x178   :  { %v299_v33 = vpop.permute.xlu0 %298 }
 0x179   :  { %v301_v34 = vmul.f32 %v1623_v27, %v299_v33 }
 0x1e9   :  { %v309_v35 = vpop.permute.xlu1 %308 }
 0x1ea   :  { %v311_v36 = vadd.f32 %v309_v35, %v301_v34  ;;  %v169_v35 = vadd.f32 %v1426_v2, %v1816_v15 }
 0x1ec   :  { %1624 = vtanh.f32 %v311_v36 }
 0x1f6   :  { %v1625_v37 = vpop.eup %1624 }
 0x1f7   :  { %314 = vrot.lane.b32.xlu1 %v1625_v37, %s1696_s5 }
 0x269   :  { %v315_v38 = vpop.permute.xlu1 %314 }
 0x26a   :  { %v317_v39 = vmul.f32 %v1623_v27, %v315_v38 }
 0x26c   :  { %321 = vrot.lane.b32.xlu0 %v317_v39, %s1697_s20 }
 0x2de   :  { %v322_v40 = vpop.permute.xlu0 %321 }
 0x2df   :  { %1453 = vmatmul.mubr.msk.f32.vlgmr.msra.gmra.mrb[2].mxu1 %vm213_vm3, %v322_v40 }
 0x2e0   :  { %1570 = vmatpush3.bf16.msra.mxu1 %v1774_v4  ;;  %1474 = vmatprep.mubr.msk.f32.mxu1 %vm1693_vm2, %v1694_v10 }
 0x2e1   :  { %1571 = vmatprep.subr.bf16.mxu1 %v1692_v3 }
 0x2e4   :  { %1573 = vmatpush3.bf16.msra.mxu1 %v1791_v9 }
 0x2e5   :  { %1580 = vmatprep.subr.bf16.mxu1 %v1692_v3 }
 0x3b2   :  { %v391_v42 = vpop.f32.mrb[2].mxu1 }
 0x3b3   :  { %v395_v43 = vadd.f32 %v391_v42, %v159_v41  ;;  %v1454_v44 = vpop.f32.mrb[3].mxu1 }
 0x3b5   :  { %v396_v45 = vmul.f32 %v395_v43, %v1819_v19 }
 0x3b7   :  { %v1331_v46 = vmul.f32 -1.442695, %v396_v45 }
 0x3b9   :  { %1626 = vpow2.f32 %v1331_v46 }
 0x3c3   :  { %v1627_v47 = vpop.eup %1626 }
 0x3c4   :  { %v400_v48 = vadd.f32 1.0, %v1627_v47 }
 0x3c6   :  { %1628 = vrcp.f32 %v400_v48 }
 0x3d0   :  { %v1629_v49 = vpop.eup %1628 }
 0x3d1   :  { %v403_v50 = vmul.f32 2.0, %v1629_v49  ;;  %v405_v54 = vmul.f32 %v1629_v49, %v311_v36 }
 0x3d3   :  { %v1332_v51 = vadd.f32 -1.0, %v403_v50 }
 0x3d5   :  { %407 = vrot.lane.b32.xlu1 %v1332_v51, %s1696_s5 }
 0x447   :  { %v408_v52 = vpop.permute.xlu1 %407 }
 0x448   :  { %v410_v53 = vmul.f32 %v1629_v49, %v408_v52 }
 0x44a   :  { %412 = vrot.lane.b32.xlu0 %v410_v53, %s1697_s20 }
 0x4bc   :  { %v413_v55 = vpop.permute.xlu0 %412 }
 0x4bd   :  { %v415_v56 = vadd.f32 %v413_v55, %v405_v54  ;;  %v174_v55 = vadd.f32 %v1816_v15, %v1871_v7 }
 0x4bf   :  { %1630 = vtanh.f32 %v415_v56 }
 0x4c9   :  { %v1631_v63 = vpop.eup %1630 }
 0x4ca   :  { %418 = vrot.lane.b32.xlu1 %v1631_v63, %s1696_s5 }
 0x53c   :  { %v419_v0 = vpop.permute.xlu1 %418 }
 0x53d   :  { %v421_v1 = vmul.f32 %v1629_v49, %v419_v0 }
 0x53f   :  { %425 = vrot.lane.b32.xlu0 %v421_v1, %s1697_s20 }
 0x5b1   :  { %v426_v12 = vpop.permute.xlu0 %425 }
 0x5b2   :  { %1464 = vmatmul.mubr.msk.f32.vlgmr.msra.gmra.mrb[8].mxu0 %vm213_vm3, %v426_v12 }
 0x5b3   :  { %1576 = vmatpush3.bf16.msra.mxu0 %v1774_v4  ;;  %1485 = vmatprep.mubr.msk.f32.mxu0 %vm1693_vm2, %v1694_v10 }
 0x5b4   :  { %1577 = vmatprep.subr.bf16.mxu0 %v1692_v3 }
 0x5b7   :  { %1579 = vmatpush3.bf16.msra.mxu0 %v1791_v9 }
 0x5b8   :  { %1586 = vmatprep.subr.bf16.mxu0 %v1692_v3 }
 0x685   :  { %v495_v14 = vpop.f32.mrb[8].mxu0 }
 0x686   :  { %v499_v16 = vadd.f32 %v495_v14, %v164_v13  ;;  %v1465_v17 = vpop.f32.mrb[9].mxu0 }
 0x688   :  { %v500_v18 = vmul.f32 %v499_v16, %v1819_v19 }
 0x68a   :  { %v1334_v20 = vmul.f32 -1.442695, %v500_v18 }
 0x68c   :  { %1632 = vpow2.f32 %v1334_v20  ;;  %v179_v20 = vadd.f32 %v1869_v6, %v1816_v15 }
 0x696   :  { %v1633_v21 = vpop.eup %1632 }
 0x697   :  { %v504_v22 = vadd.f32 1.0, %v1633_v21 }
 0x699   :  { %1634 = vrcp.f32 %v504_v22 }
 0x6a3   :  { %v1635_v23 = vpop.eup %1634 }
 0x6a4   :  { %v507_v24 = vmul.f32 2.0, %v1635_v23  ;;  %v509_v28 = vmul.f32 %v1635_v23, %v415_v56 }
 0x6a6   :  { %v1335_v25 = vadd.f32 -1.0, %v507_v24 }
 0x6a8   :  { %511 = vrot.lane.b32.xlu1 %v1335_v25, %s1696_s5 }
 0x71a   :  { %v512_v26 = vpop.permute.xlu1 %511 }
 0x71b   :  { %v514_v27 = vmul.f32 %v1635_v23, %v512_v26 }
 0x71d   :  { %516 = vrot.lane.b32.xlu0 %v514_v27, %s1697_s20 }
 0x78f   :  { %v517_v29 = vpop.permute.xlu0 %516 }
 0x790   :  { %v519_v30 = vadd.f32 %v517_v29, %v509_v28 }
 0x792   :  { %1636 = vtanh.f32 %v519_v30 }
 0x79c   :  { %v1637_v31 = vpop.eup %1636 }
 0x79d   :  { %522 = vrot.lane.b32.xlu1 %v1637_v31, %s1696_s5 }
 0x80f   :  { %v523_v32 = vpop.permute.xlu1 %522 }
 0x810   :  { %v525_v33 = vmul.f32 %v1635_v23, %v523_v32 }
 0x812   :  { %529 = vrot.lane.b32.xlu0 %v525_v33, %s1697_s20 }
 0x884   :  { %v530_v34 = vpop.permute.xlu0 %529 }
 0x885   :  { %1475 = vmatmul.mubr.msk.f32.vlgmr.msra.gmra.mrb[4].mxu1 %vm213_vm3, %v530_v34 }
 0x886   :  { %1582 = vmatpush3.bf16.msra.mxu1 %v1774_v4  ;;  %1496 = vmatprep.mubr.msk.f32.mxu1 %vm1693_vm2, %v1694_v10 }
 0x887   :  { %1583 = vmatprep.subr.bf16.mxu1 %v1692_v3 }
 0x88a   :  { %1585 = vmatpush3.bf16.msra.mxu1 %v1791_v9 }
 0x88b   :  { %1592 = vmatprep.subr.bf16.mxu1 %v1692_v3 }
 0x958   :  { %v599_v36 = vpop.f32.mrb[4].mxu1 }
 0x959   :  { %v603_v37 = vadd.f32 %v599_v36, %v169_v35  ;;  %v1476_v38 = vpop.f32.mrb[5].mxu1 }
 0x95b   :  { %v604_v39 = vmul.f32 %v603_v37, %v1819_v19  ;;  %v184_v37 = vadd.f32 %v1816_v15, %v1875_v11 }
 0x95d   :  { %v1337_v40 = vmul.f32 -1.442695, %v604_v39 }
 0x95f   :  { %1638 = vpow2.f32 %v1337_v40 }
 0x969   :  { %v1639_v41 = vpop.eup %1638 }
 0x96a   :  { %v608_v42 = vadd.f32 1.0, %v1639_v41 }
 0x96c   :  { %1640 = vrcp.f32 %v608_v42 }
 0x976   :  { %v1641_v43 = vpop.eup %1640 }
 0x977   :  { %v611_v44 = vmul.f32 2.0, %v1641_v43  ;;  %v613_v48 = vmul.f32 %v1641_v43, %v519_v30 }
 0x979   :  { %v1338_v45 = vadd.f32 -1.0, %v611_v44 }
 0x97b   :  { %615 = vrot.lane.b32.xlu1 %v1338_v45, %s1696_s5 }
 0x9ed   :  { %v616_v46 = vpop.permute.xlu1 %615 }
 0x9ee   :  { %v618_v47 = vmul.f32 %v1641_v43, %v616_v46 }
 0x9f0   :  { %620 = vrot.lane.b32.xlu0 %v618_v47, %s1697_s20 }
 0xa62   :  { %v621_v49 = vpop.permute.xlu0 %620 }
 0xa63   :  { %v623_v50 = vadd.f32 %v621_v49, %v613_v48 }
 0xa65   :  { %1642 = vtanh.f32 %v623_v50 }
 0xa6f   :  { %v1643_v51 = vpop.eup %1642 }
 0xa70   :  { %626 = vrot.lane.b32.xlu1 %v1643_v51, %s1696_s5 }
 0xae2   :  { %v627_v52 = vpop.permute.xlu1 %626 }
 0xae3   :  { %v629_v53 = vmul.f32 %v1641_v43, %v627_v52 }
 0xae5   :  { %633 = vrot.lane.b32.xlu0 %v629_v53, %s1697_s20 }
 0xb57   :  { %v634_v54 = vpop.permute.xlu0 %633 }
 0xb58   :  { %1486 = vmatmul.mubr.msk.f32.vlgmr.msra.gmra.mrb[10].mxu0 %vm213_vm3, %v634_v54 }
 0xb59   :  { %1588 = vmatpush3.bf16.msra.mxu0 %v1774_v4  ;;  %1507 = vmatprep.mubr.msk.f32.mxu0 %vm1693_vm2, %v1694_v10 }
 0xb5a   :  { %1589 = vmatprep.subr.bf16.mxu0 %v1692_v3 }
 0xb5d   :  { %1591 = vmatpush3.bf16.msra.mxu0 %v1791_v9 }
 0xb5e   :  { %1598 = vmatprep.subr.bf16.mxu0 %v1692_v3 }
 0xc2b   :  { %v703_v56 = vpop.f32.mrb[10].mxu0 }
 0xc2c   :  { %v707_v57 = vadd.f32 %v703_v56, %v174_v55  ;;  %v1487_v58 = vpop.f32.mrb[11].mxu0  ;;  %v189_v56 = vadd.f32 %v1873_v8, %v1816_v15 }
 0xc2e   :  { %v708_v59 = vmul.f32 %v707_v57, %v1819_v19 }
 0xc30   :  { %v1340_v60 = vmul.f32 -1.442695, %v708_v59 }
 0xc32   :  { %1644 = vpow2.f32 %v1340_v60 }
 0xc3c   :  { %v1645_v61 = vpop.eup %1644 }
 0xc3d   :  { %v712_v62 = vadd.f32 1.0, %v1645_v61 }
 0xc3f   :  { %1646 = vrcp.f32 %v712_v62 }
 0xc49   :  { %v1647_v63 = vpop.eup %1646 }
 0xc4a   :  { %v715_v0 = vmul.f32 2.0, %v1647_v63  ;;  %v717_v7 = vmul.f32 %v1647_v63, %v623_v50 }
 0xc4c   :  { %v1341_v1 = vadd.f32 -1.0, %v715_v0 }
 0xc4e   :  { %719 = vrot.lane.b32.xlu1 %v1341_v1, %s1696_s5 }
 0xcc0   :  { %v720_v2 = vpop.permute.xlu1 %719 }
 0xcc1   :  { %v722_v5 = vmul.f32 %v1647_v63, %v720_v2 }
 0xcc3   :  { %724 = vrot.lane.b32.xlu0 %v722_v5, %s1697_s20 }
 0xd35   :  { %v725_v12 = vpop.permute.xlu0 %724 }
 0xd36   :  { %v727_v13 = vadd.f32 %v725_v12, %v717_v7 }
 0xd38   :  { %1648 = vtanh.f32 %v727_v13 }
 0xd42   :  { %v1649_v14 = vpop.eup %1648 }
 0xd43   :  { %730 = vrot.lane.b32.xlu1 %v1649_v14, %s1696_s5  ;;  %v1048_v14 = vld [vmem:[%s2015_s6 + $0x10] sm:$0xff] }
 0xdb5   :  { %v731_v16 = vpop.permute.xlu1 %730 }
 0xdb6   :  { %v733_v17 = vmul.f32 %v1647_v63, %v731_v16 }
 0xdb8   :  { %737 = vrot.lane.b32.xlu0 %v733_v17, %s1697_s20  ;;  %v1049_v17 = vld [vmem:[%s2015_s6 + $0x18] sm:$0xff] }
 0xe2a   :  { %v738_v18 = vpop.permute.xlu0 %737 }
 0xe2b   :  { %1497 = vmatmul.mubr.msk.f32.vlgmr.msra.gmra.mrb[6].mxu1 %vm213_vm3, %v738_v18  ;;  %v1602_v18 = vpack.c.bf16 %v1049_v17, %v1048_v14 }
 0xe2c   :  { %1594 = vmatpush3.bf16.msra.mxu1 %v1774_v4  ;;  %1518 = vmatprep.mubr.msk.f32.mxu1 %vm1693_vm2, %v1694_v10 }
 0xe2d   :  { %1595 = vmatprep.subr.bf16.mxu1 %v1692_v3 }
 0xe30   :  { %1597 = vmatpush3.bf16.msra.mxu1 %v1791_v9 }
 0xe31   :  { %1604 = vmatprep.subr.bf16.mxu1 %v1692_v3 }
 0xefe   :  { %v807_v21 = vpop.f32.mrb[6].mxu1 }
 0xeff   :  { %v811_v22 = vadd.f32 %v807_v21, %v179_v20  ;;  %v1498_v23 = vpop.f32.mrb[7].mxu1  ;;  %v1133_v21 = vld [vmem:[%s2017_s8] sm:$0xff] }
 0xf01   :  { %v812_v24 = vmul.f32 %v811_v22, %v1819_v19  ;;  %v1134_v22 = vld [vmem:[%s2017_s8 + $0x8] sm:$0xff] }
 0xf02   :  { %v1605_v23 = vpack.c.bf16 %v1134_v22, %v1133_v21 }
 0xf03   :  { %v1343_v25 = vmul.f32 -1.442695, %v812_v24 }
 0xf05   :  { %1650 = vpow2.f32 %v1343_v25 }
 0xf0f   :  { %v1651_v4 = vpop.eup %1650 }
 0xf10   :  { %v816_v26 = vadd.f32 1.0, %v1651_v4 }
 0xf12   :  { %1652 = vrcp.f32 %v816_v26  ;;  %v1135_v26 = vld [vmem:[%s2017_s8 + $0x10] sm:$0xff] }
 0xf1c   :  { %v1653_v27 = vpop.eup %1652 }
 0xf1d   :  { %v819_v28 = vmul.f32 2.0, %v1653_v27  ;;  %v821_v6 = vmul.f32 %v1653_v27, %v727_v13  ;;  %v1047_v13 = vld [vmem:[%s2015_s6 + $0x8] sm:$0xff] }
 0xf1f   :  { %v1344_v29 = vadd.f32 -1.0, %v819_v28 }
 0xf21   :  { %823 = vrot.lane.b32.xlu1 %v1344_v29, %s1696_s5 }
 0xf93   :  { %v824_v9 = vpop.permute.xlu1 %823 }
 0xf94   :  { %v826_v30 = vmul.f32 %v1653_v27, %v824_v9 }
 0xf96   :  { %828 = vrot.lane.b32.xlu0 %v826_v30, %s1697_s20 }
0x1008   :  { %v829_v31 = vpop.permute.xlu0 %828 }
0x1009   :  { %v831_v32 = vadd.f32 %v829_v31, %v821_v6  ;;  %v1219_v31 = vld [vmem:[%s2019_s10 + $0x8] sm:$0xff] }
0x100b   :  { %1654 = vtanh.f32 %v831_v32 }
0x1015   :  { %v1655_v33 = vpop.eup %1654 }
0x1016   :  { %834 = vrot.lane.b32.xlu1 %v1655_v33, %s1696_s5  ;;  %v1353_v33 = vld [vmem:[%s2018_s9] ss:$0 sm:$0xff] }
0x1088   :  { %v835_v34 = vpop.permute.xlu1 %834 }
0x1089   :  { %v837_v35 = vmul.f32 %v1653_v27, %v835_v34  ;;  %v1136_v27 = vld [vmem:[%s2017_s8 + $0x18] sm:$0xff] }
0x108a   :  { %v1608_v28 = vpack.c.bf16 %v1136_v27, %v1135_v26 }
0x108b   :  { %841 = vrot.lane.b32.xlu0 %v837_v35, %s1697_s20 }
0x10fd   :  { %v842_v36 = vpop.permute.xlu0 %841 }
0x10fe   :  { %1508 = vmatmul.mubr.msk.f32.vlgmr.msra.gmra.mrb[12].mxu0 %vm213_vm3, %v842_v36 }
0x10ff   :  { %1529 = vmatprep.mubr.msk.f32.mxu0 %vm1693_vm2, %v1694_v10 }
0x11d1   :  { %v911_v38 = vpop.f32.mrb[12].mxu0 }
0x11d2   :  { %v915_v39 = vadd.f32 %v911_v38, %v184_v37  ;;  %v1509_v40 = vpop.f32.mrb[13].mxu0  ;;  %v1355_v38 = vld [vmem:[%s2020_s11] ss:$0 sm:$0xff] }
0x11d4   :  { %v916_v41 = vmul.f32 %v915_v39, %v1819_v19 }
0x11d6   :  { %v1346_v42 = vmul.f32 -1.442695, %v916_v41 }
0x11d8   :  { %1656 = vpow2.f32 %v1346_v42 }
0x11e2   :  { %v1657_v43 = vpop.eup %1656 }
0x11e3   :  { %v920_v44 = vadd.f32 1.0, %v1657_v43 }
0x11e5   :  { %1658 = vrcp.f32 %v920_v44 }
0x11ef   :  { %v1659_v45 = vpop.eup %1658 }
0x11f0   :  { %v923_v46 = vmul.f32 2.0, %v1659_v45  ;;  %v925_v11 = vmul.f32 %v1659_v45, %v831_v32 }
0x11f2   :  { %v1347_v47 = vadd.f32 -1.0, %v923_v46 }
0x11f4   :  { %927 = vrot.lane.b32.xlu1 %v1347_v47, %s1696_s5 }
0x1266   :  { %v928_v48 = vpop.permute.xlu1 %927 }
0x1267   :  { %v930_v49 = vmul.f32 %v1659_v45, %v928_v48 }
0x1269   :  { %932 = vrot.lane.b32.xlu0 %v930_v49, %s1697_s20 }
0x12db   :  { %v933_v50 = vpop.permute.xlu0 %932 }
0x12dc   :  { %v935_v51 = vadd.f32 %v933_v50, %v925_v11 }
0x12de   :  { %1660 = vtanh.f32 %v935_v51 }
0x12e8   :  { %v1661_v52 = vpop.eup %1660 }
0x12e9   :  { %938 = vrot.lane.b32.xlu1 %v1661_v52, %s1696_s5 }
0x135b   :  { %v939_v53 = vpop.permute.xlu1 %938 }
0x135c   :  { %v941_v54 = vmul.f32 %v1659_v45, %v939_v53 }
0x135e   :  { %945 = vrot.lane.b32.xlu0 %v941_v54, %s1697_s20 }
0x13d0   :  { %v946_v55 = vpop.permute.xlu0 %945 }
0x13d1   :  { %1519 = vmatmul.mubr.msk.f32.vlgmr.msra.gmra.mrb[8].mxu1 %vm213_vm3, %v946_v55 }
0x13d2   :  { %1540 = vmatprep.mubr.msk.f32.mxu1 %vm1693_vm2, %v1694_v10  ;;  %1606 = vmatpush3.bf16.msra.mxu1 %v1605_v23 }
0x13d3   :  { %1607 = vmatprep.subr.bf16.mxu1 %v1692_v3 }
0x13d6   :  { %1609 = vmatpush3.bf16.msra.mxu1 %v1608_v28 }
0x14a4   :  { %v1015_v57 = vpop.f32.mrb[8].mxu1 }
0x14a5   :  { %v1019_v58 = vadd.f32 %v1015_v57, %v189_v56  ;;  %v1520_v59 = vpop.f32.mrb[9].mxu1 }
0x14a7   :  { %v1020_v60 = vmul.f32 %v1019_v58, %v1819_v19  ;;  %v1046_v19 = vld [vmem:[%s2015_s6] sm:$0xff] }
0x14a8   :  { %v1599_v16 = vpack.c.bf16 %v1047_v13, %v1046_v19 }
0x14a9   :  { %v1349_v61 = vmul.f32 -1.442695, %v1020_v60 }
0x14aa   :  { %1600 = vmatpush3.bf16.msra.mxu0 %v1599_v16 }
0x14ab   :  { %1662 = vpow2.f32 %v1349_v61  ;;  %1601 = vmatprep.subr.bf16.mxu0 %v1692_v3 }
0x14ae   :  { %1603 = vmatpush3.bf16.msra.mxu0 %v1602_v18 }
0x14af   :  { %1610 = vmatprep.subr.bf16.mxu0 %v1692_v3  ;;  %v1351_v3 = vld [vmem:[%s2016_s7] ss:$0 sm:$0xff] }
0x14b5   :  { %v1663_v62 = vpop.eup %1662 }
0x14b6   :  { %v1024_v63 = vadd.f32 1.0, %v1663_v62 }
0x14b8   :  { %1664 = vrcp.f32 %v1024_v63 }
0x14c2   :  { %v1665_v0 = vpop.eup %1664 }
0x14c3   :  { %v1027_v1 = vmul.f32 2.0, %v1665_v0  ;;  %v1029_v15 = vmul.f32 %v1665_v0, %v935_v51 }
0x14c5   :  { %v1350_v2 = vadd.f32 -1.0, %v1027_v1 }
0x14c7   :  { %1031 = vrot.lane.b32.xlu1 %v1350_v2, %s1696_s5 }
0x1539   :  { %v1032_v5 = vpop.permute.xlu1 %1031 }
0x153a   :  { %v1034_v7 = vmul.f32 %v1665_v0, %v1032_v5 }
0x153c   :  { %1036 = vrot.lane.b32.xlu0 %v1034_v7, %s1697_s20 }
0x15ae   :  { %v1037_v8 = vpop.permute.xlu0 %1036 }
0x15af   :  { %v1039_v12 = vadd.f32 %v1037_v8, %v1029_v15 }
0x15b1   :  { %1666 = vtanh.f32 %v1039_v12 }
0x15bb   :  { %v1667_v20 = vpop.eup %1666 }
0x15bc   :  { %1042 = vrot.lane.b32.xlu1 %v1667_v20, %s1696_s5 }
0x162e   :  { %v1043_v24 = vpop.permute.xlu1 %1042 }
0x162f   :  { %v1045_v25 = vmul.f32 %v1665_v0, %v1043_v24 }
0x1631   :  { %1058 = vrot.lane.b32.xlu0 %v1045_v25, %s1697_s20 }
0x16a3   :  { %v1059_v4 = vpop.permute.xlu0 %1058 }
0x16a4   :  { %1530 = vmatmul.mubr.msk.f32.vlgmr.msra.gmra.mrb[14].mxu0 %vm213_vm3, %v1059_v4 }
0x16a5   :  { %1547 = vmatprep.mubr.msk.f32.mxu0 %vm1693_vm2, %v1694_v10  ;;  %v1218_v10 = vld [vmem:[%s2019_s10] sm:$0xff]  ;;  %s1668_s10 = scalar_lea.vmem %s1310_s0, 128 }
0x16a6   :  { %v1611_v32 = vpack.c.bf16 %v1219_v31, %v1218_v10  ;;  %p1669_p0 = scmp.ne.s32.totalorder %s1310_s0, %s1668_s10  ;;  %p1674_p2 = scmp.lt.s32.totalorder %s1668_s10, %s1668_s10 }
0x16a8   :  { %1612 = vmatpush3.bf16.msra.mxu0 %v1611_v32  ;;  %p1675_p3 = por %p1674_p2, %p1673_p1 }
0x16aa   :  { %p1676_p4 = pnand %p1675_p3, %p1669_p0 }
0x1777   :  { %v1128_v29 = vpop.f32.mrb[14].mxu0 }
0x1778   :  { %v1129_v9 = vadd.f32 %v1351_v3, %v1128_v29  ;;  %v1531_v30 = vpop.f32.mrb[15].mxu0 }
0x177a   :  { %v1132_v6 = vmax.f32 %v1129_v9, 0.0 }
0x177c   :  { %1541 = vmatmul.mubr.msk.f32.vlgmr.msra.gmra.mrb[10].mxu1 %vm213_vm3, %v1132_v6 }
0x184f   :  { %v1213_v34 = vpop.f32.mrb[10].mxu1 }
0x1850   :  { %v1214_v35 = vadd.f32 %v1353_v33, %v1213_v34  ;;  %v1542_v36 = vpop.f32.mrb[11].mxu1 }
0x1852   :  { %v1217_v37 = vmax.f32 %v1214_v35, 0.0 }
0x1854   :  { %1548 = vmatmul.mubr.msk.f32.vlgmr.msra.gmra.mrb[16].mxu0 %vm1227_vm7, %v1217_v37 }
0x1927   :  { %v1297_v39 = vpop.f32.mrb[16].mxu0 }
0x1928   :  { %v1298_v40 = vadd.f32 %v1355_v38, %v1297_v39  ;;  %v1549_v41 = vpop.f32.mrb[17].mxu0 }
0x192a   :  { %1302 = vst.msk [vmem:[#allocation3] sm:$0xff] %vm1301_vm8, %v1298_v40 }
0x192b   :  { %1679 = shalt.err (!%p1676_p4)
}
0x192c   :  { %s1680_s3 = scalar_lea.hbm %s2021_s12, 128 }
0x192d   :  { %p1681_p5 = scmp.ne.s32.totalorder %s2021_s12, %s1680_s3  ;;  %p1684_p6 = scmp.lt.u32.totalorder %s1680_s3, %s2021_s12 }
0x192f   :  { %p1686_p7 = pnand %p1684_p6, %p1681_p5 }
0x1931   :  { %1689 = shalt.err (!%p1686_p7)
}
0x1932   :  { %1312 = dma.vmem_to_hbm [thread:$0]  %s1310_s0, 128, %s2021_s12, [#allocation4]  }
0x1933   :  { %1690 = dma.done.wait [#allocation4], 128  }
0x1934   :  { %1691 = vsyncadd [#allocation4], 4294967168 }
0x1935   :  { %1316 = vsyncpa [#allocation4], 1 }

</bundles_post_ra>
